<compile_context>
chip_gen: v5e
topology: v5e:2x2
jax: 0.10.0
libtpu: 0.0.40
codegen_flags: <defaults>
</compile_context>

<pallas_src>
import math

import jax
import jax.numpy as jnp
from jax import lax
from jax.experimental import pallas as pl
from jax.experimental.pallas import tpu as pltpu


def _make_pose_head_kernel(apply_tanh: bool, min_logdisp: float,
                           max_logdisp: float):
    """Builds the per-batch-element PoseHead kernel with static config baked in."""

    def kernel(z_ref, proj_ref, w_ref, wg_ref, bd_ref,
               pred_ref, disp_ref, sim_ref, ldtok_ref):
        z = z_ref[0]            # [M, D]
        pr = proj_ref[0]        # [M, P]
        w = w_ref[...]          # [D, 8]  cols 0:2 mu_t, 2:4 mu_s, 4:8 disp
        wg = wg_ref[...]        # [P, G]  pre-scaled by exp(beta*gate_mult/2)

        # ---- fused mu/disp projection: one MXU matmul ----
        h8 = jnp.dot(z, w, preferred_element_type=jnp.float32)     # [M, 8]
        h8t = h8.T                                                  # [8, M] (tiny transpose)

        # ---- gated similarities (gate multiplier already folded into wg) ----
        hg = jnp.dot(pr, wg, preferred_element_type=jnp.float32)   # [M, G]
        sim = lax.dot_general(hg, hg, (((1,), (1,)), ((), ())),
                              preferred_element_type=jnp.float32)  # [M, M]
        sim_ref[0] = sim.astype(sim_ref.dtype)
        esim = jnp.exp(-sim)                                        # [M, M]

        # ---- per-channel lane-dense [M, M] planes ----
        for k in range(4):
            # mu: pred[k, i, j] = tanh(h[i, k] - h[j, k])
            dh = h8[:, k:k + 1] - h8t[k:k + 1, :]                   # [M, M]
            pred = jnp.tanh(dh) if apply_tanh else dh
            pred_ref[0, k] = pred.astype(pred_ref.dtype)

            # dispersion: exp(-sim + logaddexp(ld_i, ld_j))
            #           = exp(-sim) * (exp(ld_i) + exp(ld_j))
            bk = bd_ref[k]                                          # scalar (SMEM)
            ld_c = jnp.clip(h8[:, 4 + k:5 + k] + bk,
                            min_logdisp, max_logdisp)               # [M, 1]
            ld_r = jnp.clip(h8t[4 + k:5 + k, :] + bk,
                            min_logdisp, max_logdisp)               # [1, M]
            ldtok_ref[0, k] = ld_r.astype(ldtok_ref.dtype)          # per-token logdisp
            disp = esim * (jnp.exp(ld_c) + jnp.exp(ld_r))           # [M, M]
            disp_ref[0, k] = disp.astype(disp_ref.dtype)

    return kernel


def pose_head_forward(z, proj, params, *, apply_tanh=True,
                      min_logdisp=-14.0, max_logdisp=2.0, beta=100.0):
    """Pallas implementation of PoseHead.forward (uncertainty_mode='correlated_proj')."""
    B, M, D = z.shape
    P = proj.shape[-1]

    # Fused, pre-transposed projection weight: [D, 8] = [mu_t | mu_s | disp].
    w_fused = jnp.concatenate(
        [params["mu_t_w"], params["mu_s_w"], params["disp_w"]], axis=0).T    # [D, 8]
    bd = params["disp_b"].reshape(4).astype(jnp.float32)                     # SMEM (4,)

    # Fold exp(beta*gate_mult) into the gate weight via sqrt-scaling (traced
    # jnp ops: no host sync, no recompilation when the parameter changes).
    gm = jnp.exp(beta * params["gate_mult"])                                 # scalar
    wg_scaled = params["gate_w"].T * jnp.sqrt(gm)                            # [P, G]
    G = wg_scaled.shape[-1]

    kernel = _make_pose_head_kernel(apply_tanh, min_logdisp, max_logdisp)

    # Channel-major kernel outputs (lane-dense in M); f32 kept for bit-level
    # parity with the reference — switch to bf16 if downstream tolerates it
    # (halves HBM writeback, the roofline term for realistic M).
    out_shapes = (
        jax.ShapeDtypeStruct((B, 4, M, M), jnp.float32),   # pred (channel-major)
        jax.ShapeDtypeStruct((B, 4, M, M), jnp.float32),   # disp (channel-major)
        jax.ShapeDtypeStruct((B, M, M), jnp.float32),      # gated similarity logits
        jax.ShapeDtypeStruct((B, 4, 1, M), jnp.float32),   # per-token logdisp
    )

    grid_spec = pltpu.PrefetchScalarGridSpec(
        num_scalar_prefetch=0,
        grid=(B,),
        in_specs=[
            pl.BlockSpec((1, M, D), lambda b: (b, 0, 0)),             # z
            pl.BlockSpec((1, M, P), lambda b: (b, 0, 0)),             # proj
            pl.BlockSpec((D, 8), lambda b: (0, 0)),                   # fused mu/disp weight
            pl.BlockSpec((P, G), lambda b: (0, 0)),                   # scaled gate weight
            pl.BlockSpec(memory_space=pltpu.MemorySpace.SMEM),        # disp bias (4,)
        ],
        out_specs=[
            pl.BlockSpec((1, 4, M, M), lambda b: (b, 0, 0, 0)),
            pl.BlockSpec((1, 4, M, M), lambda b: (b, 0, 0, 0)),
            pl.BlockSpec((1, M, M), lambda b: (b, 0, 0)),
            pl.BlockSpec((1, 4, 1, M), lambda b: (b, 0, 0, 0)),
        ],
    )

    pred_cm, disp_cm, simlog, ldtok_cm = pl.pallas_call(
        kernel,
        out_shape=out_shapes,
        grid_spec=grid_spec,
        compiler_params=pltpu.CompilerParams(dimension_semantics=("parallel",)),
    )(z, proj, w_fused, wg_scaled, bd)

    # Channel-major kernel layout -> PyTorch layouts (cheap layout plumbing).
    pred_dT = jnp.transpose(pred_cm, (0, 2, 3, 1))        # [B, M, M, 4]
    disp_dT = jnp.transpose(disp_cm, (0, 2, 3, 1))        # [B, M, M, 4]
    disp_T = jnp.transpose(ldtok_cm[:, :, 0, :], (0, 2, 1))   # [B, M, 4]

    # ---- stats / bookkeeping glue (matches the PyTorch out-dict) ----
    out = {
        "pred_dT": pred_dT,
        "loss_pose_simlog_mean": jnp.mean(simlog),
        "loss_pose_simlog_std": jnp.std(simlog, ddof=1),   # torch .std() is unbiased
        "loss_pose_gate_mult_dy": gm,
        "loss_pose_gate_mult_dx": gm,
        "loss_pose_gate_mult_dlogh": gm,
        "loss_pose_gate_mult_dlogw": gm,
        "disp_T": disp_T,
        "loss_pose_disp_T_mean": jnp.mean(disp_T),
        "loss_pose_disp_T_std": jnp.std(disp_T, ddof=1),
        "disp_dT": disp_dT,
    }
    return out


def pose_head_reference(z, proj, params, *, apply_tanh=True,
                        min_logdisp=-14.0, max_logdisp=2.0, beta=100.0):
    """Pure-JAX reference of the PyTorch forward (for correctness check)."""
    wmu = jnp.concatenate([params["mu_t_w"], params["mu_s_w"]], axis=0)
    h = jnp.einsum("bmd,kd->bmk", z, wmu)
    dh = h[:, :, None, :] - h[:, None, :, :]
    pred = jnp.tanh(dh) if apply_tanh else dh
    ld = jnp.clip(jnp.einsum("bmd,kd->bmk", z, params["disp_w"]) + params["disp_b"],
                  min_logdisp, max_logdisp)
    ldp = jnp.logaddexp(ld[:, :, None, :], ld[:, None, :, :])
    hg = jnp.einsum("bmp,gp->bmg", proj, params["gate_w"])
    sim = jnp.einsum("bmg,bng->bmn", hg, hg) * jnp.exp(beta * params["gate_mult"])
    disp = jnp.exp(-sim[..., None] + ldp)
    return pred, disp, ld


if __name__ == "__main__":
    B, M, D, P, G = 2, 8, 32, 16, 16   # batch, tokens, embed_dim, proj_embed_dim, gate_dim
    key = jax.random.PRNGKey(0)
    ks = jax.random.split(key, 6)

    z = jax.random.normal(ks[0], (B, M, D), jnp.float32)
    proj = jax.random.normal(ks[1], (B, M, P), jnp.float32)

    init_lv = math.log(0.1 ** 2) * 0.5
    params = {
        "mu_t_w": 0.02 * jax.random.normal(ks[2], (2, D), jnp.float32),
        "mu_s_w": 0.02 * jax.random.normal(ks[3], (2, D), jnp.float32),
        "disp_w": 0.02 * jax.random.normal(ks[4], (4, D), jnp.float32),
        "disp_b": jnp.full((4,), init_lv, jnp.float32),
        "gate_w": 0.001 * jax.random.normal(ks[5], (G, P), jnp.float32),
        "gate_mult": jnp.zeros((), jnp.float32),   # frozen scalar (gate_dim > 0 path)
    }

    out = pose_head_forward(z, proj, params, apply_tanh=True)
    out = jax.tree_util.tree_map(jax.block_until_ready, out)

    # correctness check vs pure-JAX reference
    pred_ref, disp_ref, ld_ref = pose_head_reference(z, proj, params, apply_tanh=True)
    assert jnp.allclose(out["pred_dT"], pred_ref, atol=1e-5, rtol=1e-5)
    assert jnp.allclose(out["disp_dT"], disp_ref, atol=1e-5, rtol=1e-5)
    assert jnp.allclose(out["disp_T"], ld_ref, atol=1e-5, rtol=1e-5)
    assert out["pred_dT"].shape == (B, M, M, 4)
    assert out["disp_dT"].shape == (B, M, M, 4)
    assert out["disp_T"].shape == (B, M, 4)

    print("KERNEL_OK")
</pallas_src>

<mosaic_0001>
module attributes {stable_mosaic.version = 11 : i64} {
  func.func @kernel(%arg0: i32, %arg1: memref<1x8x32xf32, #tpu.memory_space<vmem>>, %arg2: memref<1x8x16xf32, #tpu.memory_space<vmem>>, %arg3: memref<32x8xf32, #tpu.memory_space<vmem>>, %arg4: memref<16x16xf32, #tpu.memory_space<vmem>>, %arg5: memref<4xf32, #tpu.memory_space<smem>>, %arg6: memref<1x4x8x8xf32, #tpu.memory_space<vmem>>, %arg7: memref<1x4x8x8xf32, #tpu.memory_space<vmem>>, %arg8: memref<1x8x8xf32, #tpu.memory_space<vmem>>, %arg9: memref<1x4x1x8xf32, #tpu.memory_space<vmem>>) attributes {dimension_semantics = [#tpu.dimension_semantics<parallel>], iteration_bounds = array<i64: 2>, scalar_prefetch = 0 : i64, scratch_operands = 0 : i64, tpu.core_type = #tpu.core_type<tc>, window_params = [{transform_indices = @transform_0, window_bounds = array<i64: 1, 8, 32>}, {transform_indices = @transform_1, window_bounds = array<i64: 1, 8, 16>}, {pipeline_mode = #tpu.pipeline_mode<synchronous>, transform_indices = @transform_2, window_bounds = array<i64: 32, 8>}, {pipeline_mode = #tpu.pipeline_mode<synchronous>, transform_indices = @transform_3, window_bounds = array<i64: 16, 16>}, {transform_indices = @transform_4, window_bounds = array<i64: 4>}, {transform_indices = @transform_5, window_bounds = array<i64: 1, 4, 8, 8>}, {transform_indices = @transform_6, window_bounds = array<i64: 1, 4, 8, 8>}, {transform_indices = @transform_7, window_bounds = array<i64: 1, 8, 8>}, {transform_indices = @transform_8, window_bounds = array<i64: 1, 4, 1, 8>}]} {
    %c0 = arith.constant 0 : index
    %c0_0 = arith.constant 0 : index
    %c0_1 = arith.constant 0 : index
    %0 = vector.load %arg1[%c0, %c0_0, %c0_1] : memref<1x8x32xf32, #tpu.memory_space<vmem>>, vector<1x8x32xf32>
    %1 = vector.shape_cast %0 : vector<1x8x32xf32> to vector<8x32xf32>
    %c0_2 = arith.constant 0 : index
    %c0_3 = arith.constant 0 : index
    %c0_4 = arith.constant 0 : index
    %2 = vector.load %arg2[%c0_2, %c0_3, %c0_4] : memref<1x8x16xf32, #tpu.memory_space<vmem>>, vector<1x8x16xf32>
    %3 = vector.shape_cast %2 : vector<1x8x16xf32> to vector<8x16xf32>
    %c0_5 = arith.constant 0 : index
    %c0_6 = arith.constant 0 : index
    %4 = vector.load %arg3[%c0_5, %c0_6] : memref<32x8xf32, #tpu.memory_space<vmem>>, vector<32x8xf32>
    %c0_7 = arith.constant 0 : index
    %c0_8 = arith.constant 0 : index
    %5 = vector.load %arg4[%c0_7, %c0_8] : memref<16x16xf32, #tpu.memory_space<vmem>>, vector<16x16xf32>
    %cst = arith.constant dense<0.000000e+00> : vector<8x8xf32>
    %6 = tpu.matmul %1, %4, %cst {dimension_numbers = #tpu.dot_dimension_numbers<[1], [0], [0], [1], [0, 0, 1, 1], [], []>} : vector<8x32xf32>, vector<32x8xf32>, vector<8x8xf32> -> vector<8x8xf32>
    %7 = tpu.transpose %6, [1, 0] : vector<8x8xf32> -> vector<8x8xf32>
    %cst_9 = arith.constant dense<0.000000e+00> : vector<8x16xf32>
    %8 = tpu.matmul %3, %5, %cst_9 {dimension_numbers = #tpu.dot_dimension_numbers<[1], [0], [0], [1], [0, 0, 1, 1], [], []>} : vector<8x16xf32>, vector<16x16xf32>, vector<8x16xf32> -> vector<8x16xf32>
    %cst_10 = arith.constant dense<0.000000e+00> : vector<8x8xf32>
    %9 = tpu.matmul %8, %8, %cst_10 {dimension_numbers = #tpu.dot_dimension_numbers<[1], [1], [0], [0], [0, 0, 1, 0], [], []>} : vector<8x16xf32>, vector<8x16xf32>, vector<8x8xf32> -> vector<8x8xf32>
    %c0_11 = arith.constant 0 : index
    %c0_12 = arith.constant 0 : index
    %c0_13 = arith.constant 0 : index
    %10 = vector.load %arg8[%c0_11, %c0_12, %c0_13] : memref<1x8x8xf32, #tpu.memory_space<vmem>>, vector<1x8x8xf32>
    %11 = vector.shape_cast %10 : vector<1x8x8xf32> to vector<8x8xf32>
    %12 = vector.shape_cast %9 : vector<8x8xf32> to vector<1x8x8xf32>
    tpu.vector_store %arg8[%c0_11, %c0_12, %c0_13], %12 {strides = array<i32>} : memref<1x8x8xf32, #tpu.memory_space<vmem>>, vector<1x8x8xf32>,
    %cst_14 = arith.constant 0.000000e+00 : f32
    %13 = vector.broadcast %cst_14 : f32 to vector<8x8xf32>
    %14 = arith.subf %13, %9 : vector<8x8xf32>
    %15 = math.exp %14 : vector<8x8xf32>
    %16 = vector.extract_strided_slice %6 {offsets = [0, 0], sizes = [8, 1], strides = [1, 1]} : vector<8x8xf32> to vector<8x1xf32>
    %17 = vector.extract_strided_slice %7 {offsets = [0, 0], sizes = [1, 8], strides = [1, 1]} : vector<8x8xf32> to vector<1x8xf32>
    %18 = vector.broadcast %16 : vector<8x1xf32> to vector<8x8xf32>
    %19 = vector.broadcast %17 : vector<1x8xf32> to vector<8x8xf32>
    %20 = arith.subf %18, %19 : vector<8x8xf32>
    %21 = math.tanh %20 : vector<8x8xf32>
    %c0_15 = arith.constant 0 : index
    %c0_16 = arith.constant 0 : index
    %c0_17 = arith.constant 0 : index
    %c0_18 = arith.constant 0 : index
    %22 = vector.load %arg6[%c0_15, %c0_16, %c0_17, %c0_18] : memref<1x4x8x8xf32, #tpu.memory_space<vmem>>, vector<1x1x8x8xf32>
    %23 = vector.shape_cast %22 : vector<1x1x8x8xf32> to vector<8x8xf32>
    %24 = vector.shape_cast %21 : vector<8x8xf32> to vector<1x1x8x8xf32>
    tpu.vector_store %arg6[%c0_15, %c0_16, %c0_17, %c0_18], %24 {strides = array<i32>} : memref<1x4x8x8xf32, #tpu.memory_space<vmem>>, vector<1x1x8x8xf32>,
    %c0_19 = arith.constant 0 : index
    %25 = memref.load %arg5[%c0_19] : memref<4xf32, #tpu.memory_space<smem>>
    %26 = vector.extract_strided_slice %6 {offsets = [0, 4], sizes = [8, 1], strides = [1, 1]} : vector<8x8xf32> to vector<8x1xf32>
    %27 = vector.broadcast %25 : f32 to vector<8x1xf32>
    %28 = arith.addf %26, %27 : vector<8x1xf32>
    %cst_20 = arith.constant -1.400000e+01 : f32
    %cst_21 = arith.constant 2.000000e+00 : f32
    %29 = vector.broadcast %cst_20 : f32 to vector<8x1xf32>
    %30 = arith.maximumf %29, %28 : vector<8x1xf32>
    %31 = vector.broadcast %cst_21 : f32 to vector<8x1xf32>
    %32 = arith.minimumf %31, %30 : vector<8x1xf32>
    %33 = vector.extract_strided_slice %7 {offsets = [4, 0], sizes = [1, 8], strides = [1, 1]} : vector<8x8xf32> to vector<1x8xf32>
    %34 = vector.broadcast %25 : f32 to vector<1x8xf32>
    %35 = arith.addf %33, %34 : vector<1x8xf32>
    %cst_22 = arith.constant -1.400000e+01 : f32
    %cst_23 = arith.constant 2.000000e+00 : f32
    %36 = vector.broadcast %cst_22 : f32 to vector<1x8xf32>
    %37 = arith.maximumf %36, %35 : vector<1x8xf32>
    %38 = vector.broadcast %cst_23 : f32 to vector<1x8xf32>
    %39 = arith.minimumf %38, %37 : vector<1x8xf32>
    %c0_24 = arith.constant 0 : index
    %c0_25 = arith.constant 0 : index
    %c0_26 = arith.constant 0 : index
    %c0_27 = arith.constant 0 : index
    %40 = vector.load %arg9[%c0_24, %c0_25, %c0_26, %c0_27] : memref<1x4x1x8xf32, #tpu.memory_space<vmem>>, vector<1x1x1x8xf32>
    %41 = vector.shape_cast %40 : vector<1x1x1x8xf32> to vector<1x8xf32>
    %42 = vector.shape_cast %39 : vector<1x8xf32> to vector<1x1x1x8xf32>
    tpu.vector_store %arg9[%c0_24, %c0_25, %c0_26, %c0_27], %42 {strides = array<i32>} : memref<1x4x1x8xf32, #tpu.memory_space<vmem>>, vector<1x1x1x8xf32>,
    %43 = math.exp %32 : vector<8x1xf32>
    %44 = math.exp %39 : vector<1x8xf32>
    %45 = vector.broadcast %43 : vector<8x1xf32> to vector<8x8xf32>
    %46 = vector.broadcast %44 : vector<1x8xf32> to vector<8x8xf32>
    %47 = arith.addf %45, %46 : vector<8x8xf32>
    %48 = arith.mulf %15, %47 : vector<8x8xf32>
    %c0_28 = arith.constant 0 : index
    %c0_29 = arith.constant 0 : index
    %c0_30 = arith.constant 0 : index
    %c0_31 = arith.constant 0 : index
    %49 = vector.load %arg7[%c0_28, %c0_29, %c0_30, %c0_31] : memref<1x4x8x8xf32, #tpu.memory_space<vmem>>, vector<1x1x8x8xf32>
    %50 = vector.shape_cast %49 : vector<1x1x8x8xf32> to vector<8x8xf32>
    %51 = vector.shape_cast %48 : vector<8x8xf32> to vector<1x1x8x8xf32>
    tpu.vector_store %arg7[%c0_28, %c0_29, %c0_30, %c0_31], %51 {strides = array<i32>} : memref<1x4x8x8xf32, #tpu.memory_space<vmem>>, vector<1x1x8x8xf32>,
    %52 = vector.extract_strided_slice %6 {offsets = [0, 1], sizes = [8, 1], strides = [1, 1]} : vector<8x8xf32> to vector<8x1xf32>
    %53 = vector.extract_strided_slice %7 {offsets = [1, 0], sizes = [1, 8], strides = [1, 1]} : vector<8x8xf32> to vector<1x8xf32>
    %54 = vector.broadcast %52 : vector<8x1xf32> to vector<8x8xf32>
    %55 = vector.broadcast %53 : vector<1x8xf32> to vector<8x8xf32>
    %56 = arith.subf %54, %55 : vector<8x8xf32>
    %57 = math.tanh %56 : vector<8x8xf32>
    %c0_32 = arith.constant 0 : index
    %c1 = arith.constant 1 : index
    %c0_33 = arith.constant 0 : index
    %c0_34 = arith.constant 0 : index
    %58 = vector.load %arg6[%c0_32, %c1, %c0_33, %c0_34] : memref<1x4x8x8xf32, #tpu.memory_space<vmem>>, vector<1x1x8x8xf32>
    %59 = vector.shape_cast %58 : vector<1x1x8x8xf32> to vector<8x8xf32>
    %60 = vector.shape_cast %57 : vector<8x8xf32> to vector<1x1x8x8xf32>
    tpu.vector_store %arg6[%c0_32, %c1, %c0_33, %c0_34], %60 {strides = array<i32>} : memref<1x4x8x8xf32, #tpu.memory_space<vmem>>, vector<1x1x8x8xf32>,
    %c1_35 = arith.constant 1 : index
    %61 = memref.load %arg5[%c1_35] : memref<4xf32, #tpu.memory_space<smem>>
    %62 = vector.extract_strided_slice %6 {offsets = [0, 5], sizes = [8, 1], strides = [1, 1]} : vector<8x8xf32> to vector<8x1xf32>
    %63 = vector.broadcast %61 : f32 to vector<8x1xf32>
    %64 = arith.addf %62, %63 : vector<8x1xf32>
    %cst_36 = arith.constant -1.400000e+01 : f32
    %cst_37 = arith.constant 2.000000e+00 : f32
    %65 = vector.broadcast %cst_36 : f32 to vector<8x1xf32>
    %66 = arith.maximumf %65, %64 : vector<8x1xf32>
    %67 = vector.broadcast %cst_37 : f32 to vector<8x1xf32>
    %68 = arith.minimumf %67, %66 : vector<8x1xf32>
    %69 = vector.extract_strided_slice %7 {offsets = [5, 0], sizes = [1, 8], strides = [1, 1]} : vector<8x8xf32> to vector<1x8xf32>
    %70 = vector.broadcast %61 : f32 to vector<1x8xf32>
    %71 = arith.addf %69, %70 : vector<1x8xf32>
    %cst_38 = arith.constant -1.400000e+01 : f32
    %cst_39 = arith.constant 2.000000e+00 : f32
    %72 = vector.broadcast %cst_38 : f32 to vector<1x8xf32>
    %73 = arith.maximumf %72, %71 : vector<1x8xf32>
    %74 = vector.broadcast %cst_39 : f32 to vector<1x8xf32>
    %75 = arith.minimumf %74, %73 : vector<1x8xf32>
    %c0_40 = arith.constant 0 : index
    %c1_41 = arith.constant 1 : index
    %c0_42 = arith.constant 0 : index
    %c0_43 = arith.constant 0 : index
    %76 = vector.load %arg9[%c0_40, %c1_41, %c0_42, %c0_43] : memref<1x4x1x8xf32, #tpu.memory_space<vmem>>, vector<1x1x1x8xf32>
    %77 = vector.shape_cast %76 : vector<1x1x1x8xf32> to vector<1x8xf32>
    %78 = vector.shape_cast %75 : vector<1x8xf32> to vector<1x1x1x8xf32>
    tpu.vector_store %arg9[%c0_40, %c1_41, %c0_42, %c0_43], %78 {strides = array<i32>} : memref<1x4x1x8xf32, #tpu.memory_space<vmem>>, vector<1x1x1x8xf32>,
    %79 = math.exp %68 : vector<8x1xf32>
    %80 = math.exp %75 : vector<1x8xf32>
    %81 = vector.broadcast %79 : vector<8x1xf32> to vector<8x8xf32>
    %82 = vector.broadcast %80 : vector<1x8xf32> to vector<8x8xf32>
    %83 = arith.addf %81, %82 : vector<8x8xf32>
    %84 = arith.mulf %15, %83 : vector<8x8xf32>
    %c0_44 = arith.constant 0 : index
    %c1_45 = arith.constant 1 : index
    %c0_46 = arith.constant 0 : index
    %c0_47 = arith.constant 0 : index
    %85 = vector.load %arg7[%c0_44, %c1_45, %c0_46, %c0_47] : memref<1x4x8x8xf32, #tpu.memory_space<vmem>>, vector<1x1x8x8xf32>
    %86 = vector.shape_cast %85 : vector<1x1x8x8xf32> to vector<8x8xf32>
    %87 = vector.shape_cast %84 : vector<8x8xf32> to vector<1x1x8x8xf32>
    tpu.vector_store %arg7[%c0_44, %c1_45, %c0_46, %c0_47], %87 {strides = array<i32>} : memref<1x4x8x8xf32, #tpu.memory_space<vmem>>, vector<1x1x8x8xf32>,
    %88 = vector.extract_strided_slice %6 {offsets = [0, 2], sizes = [8, 1], strides = [1, 1]} : vector<8x8xf32> to vector<8x1xf32>
    %89 = vector.extract_strided_slice %7 {offsets = [2, 0], sizes = [1, 8], strides = [1, 1]} : vector<8x8xf32> to vector<1x8xf32>
    %90 = vector.broadcast %88 : vector<8x1xf32> to vector<8x8xf32>
    %91 = vector.broadcast %89 : vector<1x8xf32> to vector<8x8xf32>
    %92 = arith.subf %90, %91 : vector<8x8xf32>
    %93 = math.tanh %92 : vector<8x8xf32>
    %c0_48 = arith.constant 0 : index
    %c2 = arith.constant 2 : index
    %c0_49 = arith.constant 0 : index
    %c0_50 = arith.constant 0 : index
    %94 = vector.load %arg6[%c0_48, %c2, %c0_49, %c0_50] : memref<1x4x8x8xf32, #tpu.memory_space<vmem>>, vector<1x1x8x8xf32>
    %95 = vector.shape_cast %94 : vector<1x1x8x8xf32> to vector<8x8xf32>
    %96 = vector.shape_cast %93 : vector<8x8xf32> to vector<1x1x8x8xf32>
    tpu.vector_store %arg6[%c0_48, %c2, %c0_49, %c0_50], %96 {strides = array<i32>} : memref<1x4x8x8xf32, #tpu.memory_space<vmem>>, vector<1x1x8x8xf32>,
    %c2_51 = arith.constant 2 : index
    %97 = memref.load %arg5[%c2_51] : memref<4xf32, #tpu.memory_space<smem>>
    %98 = vector.extract_strided_slice %6 {offsets = [0, 6], sizes = [8, 1], strides = [1, 1]} : vector<8x8xf32> to vector<8x1xf32>
    %99 = vector.broadcast %97 : f32 to vector<8x1xf32>
    %100 = arith.addf %98, %99 : vector<8x1xf32>
    %cst_52 = arith.constant -1.400000e+01 : f32
    %cst_53 = arith.constant 2.000000e+00 : f32
    %101 = vector.broadcast %cst_52 : f32 to vector<8x1xf32>
    %102 = arith.maximumf %101, %100 : vector<8x1xf32>
    %103 = vector.broadcast %cst_53 : f32 to vector<8x1xf32>
    %104 = arith.minimumf %103, %102 : vector<8x1xf32>
    %105 = vector.extract_strided_slice %7 {offsets = [6, 0], sizes = [1, 8], strides = [1, 1]} : vector<8x8xf32> to vector<1x8xf32>
    %106 = vector.broadcast %97 : f32 to vector<1x8xf32>
    %107 = arith.addf %105, %106 : vector<1x8xf32>
    %cst_54 = arith.constant -1.400000e+01 : f32
    %cst_55 = arith.constant 2.000000e+00 : f32
    %108 = vector.broadcast %cst_54 : f32 to vector<1x8xf32>
    %109 = arith.maximumf %108, %107 : vector<1x8xf32>
    %110 = vector.broadcast %cst_55 : f32 to vector<1x8xf32>
    %111 = arith.minimumf %110, %109 : vector<1x8xf32>
    %c0_56 = arith.constant 0 : index
    %c2_57 = arith.constant 2 : index
    %c0_58 = arith.constant 0 : index
    %c0_59 = arith.constant 0 : index
    %112 = vector.load %arg9[%c0_56, %c2_57, %c0_58, %c0_59] : memref<1x4x1x8xf32, #tpu.memory_space<vmem>>, vector<1x1x1x8xf32>
    %113 = vector.shape_cast %112 : vector<1x1x1x8xf32> to vector<1x8xf32>
    %114 = vector.shape_cast %111 : vector<1x8xf32> to vector<1x1x1x8xf32>
    tpu.vector_store %arg9[%c0_56, %c2_57, %c0_58, %c0_59], %114 {strides = array<i32>} : memref<1x4x1x8xf32, #tpu.memory_space<vmem>>, vector<1x1x1x8xf32>,
    %115 = math.exp %104 : vector<8x1xf32>
    %116 = math.exp %111 : vector<1x8xf32>
    %117 = vector.broadcast %115 : vector<8x1xf32> to vector<8x8xf32>
    %118 = vector.broadcast %116 : vector<1x8xf32> to vector<8x8xf32>
    %119 = arith.addf %117, %118 : vector<8x8xf32>
    %120 = arith.mulf %15, %119 : vector<8x8xf32>
    %c0_60 = arith.constant 0 : index
    %c2_61 = arith.constant 2 : index
    %c0_62 = arith.constant 0 : index
    %c0_63 = arith.constant 0 : index
    %121 = vector.load %arg7[%c0_60, %c2_61, %c0_62, %c0_63] : memref<1x4x8x8xf32, #tpu.memory_space<vmem>>, vector<1x1x8x8xf32>
    %122 = vector.shape_cast %121 : vector<1x1x8x8xf32> to vector<8x8xf32>
    %123 = vector.shape_cast %120 : vector<8x8xf32> to vector<1x1x8x8xf32>
    tpu.vector_store %arg7[%c0_60, %c2_61, %c0_62, %c0_63], %123 {strides = array<i32>} : memref<1x4x8x8xf32, #tpu.memory_space<vmem>>, vector<1x1x8x8xf32>,
    %124 = vector.extract_strided_slice %6 {offsets = [0, 3], sizes = [8, 1], strides = [1, 1]} : vector<8x8xf32> to vector<8x1xf32>
    %125 = vector.extract_strided_slice %7 {offsets = [3, 0], sizes = [1, 8], strides = [1, 1]} : vector<8x8xf32> to vector<1x8xf32>
    %126 = vector.broadcast %124 : vector<8x1xf32> to vector<8x8xf32>
    %127 = vector.broadcast %125 : vector<1x8xf32> to vector<8x8xf32>
    %128 = arith.subf %126, %127 : vector<8x8xf32>
    %129 = math.tanh %128 : vector<8x8xf32>
    %c0_64 = arith.constant 0 : index
    %c3 = arith.constant 3 : index
    %c0_65 = arith.constant 0 : index
    %c0_66 = arith.constant 0 : index
    %130 = vector.load %arg6[%c0_64, %c3, %c0_65, %c0_66] : memref<1x4x8x8xf32, #tpu.memory_space<vmem>>, vector<1x1x8x8xf32>
    %131 = vector.shape_cast %130 : vector<1x1x8x8xf32> to vector<8x8xf32>
    %132 = vector.shape_cast %129 : vector<8x8xf32> to vector<1x1x8x8xf32>
    tpu.vector_store %arg6[%c0_64, %c3, %c0_65, %c0_66], %132 {strides = array<i32>} : memref<1x4x8x8xf32, #tpu.memory_space<vmem>>, vector<1x1x8x8xf32>,
    %c3_67 = arith.constant 3 : index
    %133 = memref.load %arg5[%c3_67] : memref<4xf32, #tpu.memory_space<smem>>
    %134 = vector.extract_strided_slice %6 {offsets = [0, 7], sizes = [8, 1], strides = [1, 1]} : vector<8x8xf32> to vector<8x1xf32>
    %135 = vector.broadcast %133 : f32 to vector<8x1xf32>
    %136 = arith.addf %134, %135 : vector<8x1xf32>
    %cst_68 = arith.constant -1.400000e+01 : f32
    %cst_69 = arith.constant 2.000000e+00 : f32
    %137 = vector.broadcast %cst_68 : f32 to vector<8x1xf32>
    %138 = arith.maximumf %137, %136 : vector<8x1xf32>
    %139 = vector.broadcast %cst_69 : f32 to vector<8x1xf32>
    %140 = arith.minimumf %139, %138 : vector<8x1xf32>
    %141 = vector.extract_strided_slice %7 {offsets = [7, 0], sizes = [1, 8], strides = [1, 1]} : vector<8x8xf32> to vector<1x8xf32>
    %142 = vector.broadcast %133 : f32 to vector<1x8xf32>
    %143 = arith.addf %141, %142 : vector<1x8xf32>
    %cst_70 = arith.constant -1.400000e+01 : f32
    %cst_71 = arith.constant 2.000000e+00 : f32
    %144 = vector.broadcast %cst_70 : f32 to vector<1x8xf32>
    %145 = arith.maximumf %144, %143 : vector<1x8xf32>
    %146 = vector.broadcast %cst_71 : f32 to vector<1x8xf32>
    %147 = arith.minimumf %146, %145 : vector<1x8xf32>
    %c0_72 = arith.constant 0 : index
    %c3_73 = arith.constant 3 : index
    %c0_74 = arith.constant 0 : index
    %c0_75 = arith.constant 0 : index
    %148 = vector.load %arg9[%c0_72, %c3_73, %c0_74, %c0_75] : memref<1x4x1x8xf32, #tpu.memory_space<vmem>>, vector<1x1x1x8xf32>
    %149 = vector.shape_cast %148 : vector<1x1x1x8xf32> to vector<1x8xf32>
    %150 = vector.shape_cast %147 : vector<1x8xf32> to vector<1x1x1x8xf32>
    tpu.vector_store %arg9[%c0_72, %c3_73, %c0_74, %c0_75], %150 {strides = array<i32>} : memref<1x4x1x8xf32, #tpu.memory_space<vmem>>, vector<1x1x1x8xf32>,
    %151 = math.exp %140 : vector<8x1xf32>
    %152 = math.exp %147 : vector<1x8xf32>
    %153 = vector.broadcast %151 : vector<8x1xf32> to vector<8x8xf32>
    %154 = vector.broadcast %152 : vector<1x8xf32> to vector<8x8xf32>
    %155 = arith.addf %153, %154 : vector<8x8xf32>
    %156 = arith.mulf %15, %155 : vector<8x8xf32>
    %c0_76 = arith.constant 0 : index
    %c3_77 = arith.constant 3 : index
    %c0_78 = arith.constant 0 : index
    %c0_79 = arith.constant 0 : index
    %157 = vector.load %arg7[%c0_76, %c3_77, %c0_78, %c0_79] : memref<1x4x8x8xf32, #tpu.memory_space<vmem>>, vector<1x1x8x8xf32>
    %158 = vector.shape_cast %157 : vector<1x1x8x8xf32> to vector<8x8xf32>
    %159 = vector.shape_cast %156 : vector<8x8xf32> to vector<1x1x8x8xf32>
    tpu.vector_store %arg7[%c0_76, %c3_77, %c0_78, %c0_79], %159 {strides = array<i32>} : memref<1x4x8x8xf32, #tpu.memory_space<vmem>>, vector<1x1x8x8xf32>,
    return
  }
  func.func @transform_0(%arg0: i32) -> (i32, i32, i32) {
    %c0_i32 = arith.constant 0 : i32
    %c0_i32_0 = arith.constant 0 : i32
    %c0_i32_1 = arith.constant 0 : i32
    return %arg0, %c0_i32, %c0_i32_0 : i32, i32, i32
  }
  func.func @transform_1(%arg0: i32) -> (i32, i32, i32) {
    %c0_i32 = arith.constant 0 : i32
    %c0_i32_0 = arith.constant 0 : i32
    %c0_i32_1 = arith.constant 0 : i32
    return %arg0, %c0_i32, %c0_i32_0 : i32, i32, i32
  }
  func.func @transform_2(%arg0: i32) -> (i32, i32) {
    %c0_i32 = arith.constant 0 : i32
    %c0_i32_0 = arith.constant 0 : i32
    %c0_i32_1 = arith.constant 0 : i32
    return %c0_i32, %c0_i32_0 : i32, i32
  }
  func.func @transform_3(%arg0: i32) -> (i32, i32) {
    %c0_i32 = arith.constant 0 : i32
    %c0_i32_0 = arith.constant 0 : i32
    %c0_i32_1 = arith.constant 0 : i32
    return %c0_i32, %c0_i32_0 : i32, i32
  }
  func.func @transform_4(%arg0: i32) -> i32 {
    %c0_i32 = arith.constant 0 : i32
    %c0_i32_0 = arith.constant 0 : i32
    return %c0_i32 : i32
  }
  func.func @transform_5(%arg0: i32) -> (i32, i32, i32, i32) {
    %c0_i32 = arith.constant 0 : i32
    %c0_i32_0 = arith.constant 0 : i32
    %c0_i32_1 = arith.constant 0 : i32
    %c0_i32_2 = arith.constant 0 : i32
    return %arg0, %c0_i32, %c0_i32_0, %c0_i32_1 : i32, i32, i32, i32
  }
  func.func @transform_6(%arg0: i32) -> (i32, i32, i32, i32) {
    %c0_i32 = arith.constant 0 : i32
    %c0_i32_0 = arith.constant 0 : i32
    %c0_i32_1 = arith.constant 0 : i32
    %c0_i32_2 = arith.constant 0 : i32
    return %arg0, %c0_i32, %c0_i32_0, %c0_i32_1 : i32, i32, i32, i32
  }
  func.func @transform_7(%arg0: i32) -> (i32, i32, i32) {
    %c0_i32 = arith.constant 0 : i32
    %c0_i32_0 = arith.constant 0 : i32
    %c0_i32_1 = arith.constant 0 : i32
    return %arg0, %c0_i32, %c0_i32_0 : i32, i32, i32
  }
  func.func @transform_8(%arg0: i32) -> (i32, i32, i32, i32) {
    %c0_i32 = arith.constant 0 : i32
    %c0_i32_0 = arith.constant 0 : i32
    %c0_i32_1 = arith.constant 0 : i32
    %c0_i32_2 = arith.constant 0 : i32
    return %arg0, %c0_i32, %c0_i32_0, %c0_i32_1 : i32, i32, i32, i32
  }
}

</mosaic_0001>

<bundles_post_ra>
// kernel: tpu_custom_call.1
= control target key start
LH: loop header
LB: loop body
LE: loop exit
PB: predicated region body
PF: predicated region fallthrough
CT: control target
= control target key end

     0   :  { %s1636_s0 = inlined_call_operand.vmem [shape: f32[2,8,32], index: 0, kind: input, shape index: {}]   ;;  %s1637_s1 = inlined_call_operand.vmem [shape: f32[2,8,16], index: 1, kind: input, shape index: {}]   ;;  %s1638_s2 = inlined_call_operand.vmem [shape: f32[32,8], index: 2, kind: input, shape index: {}]   ;;  %s1639_s3 = inlined_call_operand.hbm [shape: f32[16,16], index: 3, kind: input, shape index: {}]   ;;  %s1640_s4 = inlined_call_operand.vmem [shape: f32[4], index: 4, kind: input, shape index: {}]   ;;  %s1641_s5 = inlined_call_operand.hbm [shape: f32[2,4,8,8], index: 5, kind: output, shape index: {0}]   ;;  %s1642_s6 = inlined_call_operand.hbm [shape: f32[2,4,8,8], index: 6, kind: output, shape index: {1}]   ;;  %s1643_s7 = inlined_call_operand.hbm [shape: f32[2,8,8], index: 7, kind: output, shape index: {2}]   ;;  %s1644_s8 = inlined_call_operand.hbm [shape: f32[2,4,1,8], index: 8, kind: output, shape index: {3}]  }
   0x1   :  { %1648 = sst [smem:[#allocation20_spill]] %s1636_s0 }
   0x2   :  { %1649 = sst [smem:[#allocation21_spill]] %s1637_s1 }
   0x3   :  { %1650 = sst [smem:[#allocation22_spill]] %s1638_s2 }
   0x4   :  { %1651 = sst [smem:[#allocation23_spill]] %s1639_s3 }
   0x5   :  { %1652 = sst [smem:[#allocation24_spill]] %s1640_s4 }
   0x6   :  { %14 = vsyncpa [#allocation3], 0 }
   0x7   :  { %15 = vsyncpa [#allocation5], 0 }
   0x8   :  { %16 = vsyncpa [#allocation4], 0 }
   0x9   :  { %18 = vsyncpa [#allocation4 + $0x1], 0 }
   0xa   :  { %19 = vsyncpa [#allocation9], 0 }
   0xb   :  { %21 = vsyncpa [#allocation9 + $0x1], 0 }
   0xc   :  { %22 = vsyncpa [#allocation12], 0 }
   0xd   :  { %24 = vsyncpa [#allocation12 + $0x1], 0  ;;  %s1338_s27 = smov 0   ;;  %s1340_s28 = smov 0  }
   0xe   :  { %s1342_s29 = smov 0   ;;  %s1344_s30 = smov 0  }
   0xf LB: > { %1653 = sst [smem:[#allocation18_spill]] %s1271_s29  ;;  %s1359_s9 = sadd.s32 4294967295, %s1275_s30   ;;  %s1275_s30 = sphi %s1344_s30, %s1671_s30   ;;  %s1271_s29 = sphi %s1342_s29, %s1668_s29   ;;  %s1267_s28 = sphi %s1340_s28, %s1670_s28   ;;  %s1263_s27 = sphi %s1338_s27, %s1669_s27  }
  0x10   : > { %s1645_s10 = sadd.s32 4294967294, %s1275_s30   ;;  %s1363_s11 = sadd.s32 1, %s1275_s30  }
  0x11   : > { %s152_s12 = sadd.s32 1, %s1271_s29  ;;  %s149_s13 = ssub.s32 %s1275_s30, %s1363_s11 }
  0x12   : > { %p162_p0 = scmp.ne.s32.totalorder %s1271_s29, %s1267_s28  ;;  %p150_p1 = scmp.eq.s32.totalorder %s149_s13, 0 }
  0x13   : > { %p163_p2 = scmp.eq.s32.totalorder %s1359_s9, 1  ;;  %p168_p3 = scmp.ne.s32.totalorder %s1267_s28, %s1263_s27 }
  0x14   : > { %p169_p4 = scmp.eq.s32.totalorder %s1645_s10, 1  ;;  %p900_p7 = scmp.ge.s32.totalorder %s1275_s30, 1 }
  0x15   : > { %s1376_s14 = scalar_select %p150_p1, %s1271_s29, %s152_s12  }
  0x16   : > { %p1378_p5 = por %p163_p2, %p162_p0  ;;  %p1382_p6 = por %p169_p4, %p168_p3 }
  0x17   : > { %1654 = sst [smem:[#allocation19_spill]] %s1376_s14  ;;  %p254_p8 = scmp.lt.s32.totalorder %s1275_s30, 3 }
  0x18   : > { %p979_p9 = scmp.eq.s32.totalorder %s1359_s9, 0  ;;  %s1658_s3 = sld [smem:[#allocation23_spill]] }
  0x19   : > { %p1389_p10 = pnand %p900_p7, %p254_p8  ;;  %s1277_s21 = smov [#allocation2]  }
  0x1a   : > { %s270_s22 = sshll.u32 %s1277_s21, 4  ;;  %s1659_s4 = sld [smem:[#allocation24_spill]]  ;;  %s271_s22 = int_to_ptr.vmem [resolvable:$true] %s270_s22 }
  0x1b   : > { %p959_p11 = pneg %p1389_p10  ;;  %s1278_s26 = smov 128  }
  0x1c   : > { %s1279_s12 = smov 8   ;;  %s1280_s13 = smov [#allocation6]  }
  0x1d   : > { %p960_p12 = pnand %p979_p9, %p959_p11  ;;  %310 = sbr.rel (%p1389_p10) target bundleno = 417 (0x1a1), region = 40 }
  0x1e   : > { %s268_s20 = sshll.u32 %s1658_s3, 4  ;;  %s269_s20 = int_to_ptr.hbm [resolvable:$true] %s268_s20 }
  0x1f   : > { %962 = dma.hbm_to_vmem [thread:$0]  (!%p960_p12), %s269_s20, 256, %s271_s22, [#allocation3], %s1278_s26, %s1278_s26, %s1279_s12  }
  0x20   : > { %s283_s25 = sshll.u32 %s1659_s4, 4  ;;  %s284_s25 = int_to_ptr.vmem [resolvable:$true] %s283_s25 }
  0x21   : > { %965 = dma.vmem_to_smem (!%p960_p12), %s284_s25, 16, %s1280_s13, [#allocation5]  }
  0x22   : > { %1242 = dma.done.wait (%p979_p9), [#allocation3], 256  }
  0x23   : > { %1244 = vsyncadd (%p979_p9), [#allocation3], 4294967040 }
  0x24   : > { %1246 = dma.done.wait (%p979_p9), [#allocation5], 16  }
  0x25   : > { %1248 = vsyncadd (%p979_p9), [#allocation5], 4294967280 }
  0x26   : > { %322 = sfence }
  0x27   : > { %s1660_s2 = sld [smem:[#allocation22_spill]]  ;;  %p369_p13 = scmp.lt.s32.totalorder %s1359_s9, 1  ;;  %v384_v2 = vld [vmem:[#allocation2 + $0x8] sm:$0xff]  ;;  %v383_v3 = vld [vmem:[#allocation2] sm:$0xff]  ;;  %v1281_v5 = vmov 3   ;;  %v1282_v6 = vmov 1  }
  0x28   : > { %459 = vmatpush.msra.mxu1 %v384_v2  ;;  %1036 = vset.pattern.permute.xlu2 %v1281_v5  ;;  %vm441_vm0 = vcmask 130048   ;;  %s1661_s0 = sld [smem:[#allocation20_spill]]  ;;  %vm385_vm1 = vcmask 261120   ;;  %v1283_v27 = vmov 2   ;;  %v1284_v28 = vmov 4   ;;  %s1455_s25 = sand.u32 1, %s1267_s28  }
  0x29   : > { %s370_s23 = scalar_select %p369_p13, %s1359_s9, 1  ;;  %1034 = vset.pattern.permute.xlu1 %v1282_v6  ;;  %v1285_v36 = vmov 5   ;;  %v1286_v38 = vmov 6   ;;  %v1287_v40 = vmov 7   ;;  %v1288_v41 = vmov 0  }
  0x2a   : > { %460 = vmatpush.msra.mxu1 %v383_v3  ;;  %s1662_s1 = sld [smem:[#allocation21_spill]]  ;;  %vm488_vm2 = vcmask 64512   ;;  %s907_s13 = sshll.u32 %s1455_s25, 5  ;;  %vm510_vm3 = vcmask 61444   ;;  %vm543_vm4 = vcmask 62469  }
  0x2b   : > { %s911_s26 = sshll.u32 %s370_s23, 3  ;;  %s1434_s21 = sld [smem:[#allocation6]] }
  0x2c   : > { %s1436_s22 = sld [smem:[#allocation6 + $0x1]]  ;;  %s1493_s19 = scalar_lea.vmem [#allocation7], %s907_s13 }
  0x2d   : > { %v382_v0 = vld [vmem:[%s1660_s2 + $0x18] sm:$0xff]  ;;  %v381_v1 = vld [vmem:[%s1660_s2 + $0x10] sm:$0xff]  ;;  %v380_v4 = vld [vmem:[%s1660_s2 + $0x8] sm:$0xff]  ;;  %s1438_s23 = sld [smem:[#allocation6 + $0x2]]  ;;  %s1133_s4 = scalar_lea.hbm %s1642_s6, 64 }
  0x2e   : > { %401 = vmatpush.msra.mxu0 %v382_v0  ;;  %v379_v7 = vld [vmem:[%s1660_s2] sm:$0xff]  ;;  %s372_s18 = scalar_lea.vmem %s1661_s0, %s911_s26  ;;  %s1440_s24 = sld [smem:[#allocation6 + $0x3]] }
  0x2f   : > { %v377_v8 = vld [vmem:[%s372_s18] sm:$0xff]  ;;  %s354_s0 = scalar_lea.vmem [#allocation8], %s907_s13 }
  0x30   : > { %402 = vmatpush.msra.mxu0 %v381_v1  ;;  %s376_s20 = scalar_lea.vmem %s1662_s1, %s911_s26  ;;  %s909_s26 = sshll.u32 %s1455_s25, 3 }
  0x31   : > { %v378_v9 = vld [vmem:[%s376_s20] sm:$0xff]  ;;  %v503_v10 = vstv %s1434_s21  ;;  %s1458_s12 = scalar_lea.vmem [#allocation10], %s909_s26  ;;  %s1646_s20 = sshll.u32 %s1359_s9, 5 }
  0x32   : > { %403 = vmatpush.msra.mxu0 %v380_v4  ;;  %914 = vmatmul.msk.f32.vlgmr.msra.gmra.mxu1 %vm441_vm0, %v378_v9  ;;  %v535_v11 = vstv %s1436_s22  ;;  %s689_s17 = sshll.u32 %s1458_s12, 4  ;;  %s937_s21 = sshll.u32 %s1359_s9, 3  ;;  %s1505_s17 = int_to_ptr.vmem [resolvable:$true] %s689_s17 }
  0x33   : > { %v569_v12 = vstv %s1438_s23  ;;  %s671_s26 = scalar_lea.hbm %s1642_s6, %s1646_s20  ;;  %s687_s18 = scalar_lea.hbm %s1643_s7, %s937_s21 }
  0x34   : > { %404 = vmatpush.msra.mxu0 %v379_v7  ;;  %v603_v18 = vstv %s1440_s24  ;;  %s938_s22 = sshll.u32 %s1359_s9, 2  ;;  %s672_s1 = sshll.u32 %s354_s0, 4  ;;  %s673_s1 = int_to_ptr.vmem [resolvable:$true] %s672_s1 }
  0x35   : > { %913 = vmatmul.msk.f32.vlgmr.msra.gmra.mxu0 %vm385_vm1, %v377_v8  ;;  %s674_s23 = sshll.u32 %s671_s26, 4  ;;  %s691_s24 = sshll.u32 %s687_s18, 4  ;;  %s675_s23 = int_to_ptr.hbm [resolvable:$true] %s674_s23  ;;  %s1531_s24 = int_to_ptr.hbm [resolvable:$true] %s691_s24 }
  0x36   : > { %s1663_s20 = sshll.u32 %s1455_s25, 2  ;;  %s1527_s3 = scalar_lea.hbm %s1644_s8, %s938_s22 }
  0x37   : > { %s1520_s2 = scalar_lea.vmem [#allocation11], %s1663_s20  ;;  %s704_s13 = sshll.u32 %s1527_s3, 4  ;;  %s705_s13 = int_to_ptr.hbm [resolvable:$true] %s704_s13 }
  0x38   : > { %s702_s10 = sshll.u32 %s1520_s2, 4  ;;  %s1664_s18 = sand.u32 1, %s1359_s9   ;;  %s1533_s10 = int_to_ptr.vmem [resolvable:$true] %s702_s10 }
  0x39   : > { %s1539_s20 = scalar_lea.sflag [#allocation9], %s1664_s18  ;;  %s1127_s22 = sshra.s32 %s675_s23, 4  ;;  %s1128_s22 = int_to_ptr.hbm [resolvable:$true] %s1127_s22 }
  0x3a   : > { %s1129_s26 = scalar_lea.hbm %s1128_s22, 32  ;;  %p1134_p3 = scmp.lt.s32.totalorder %s1128_s22, %s1642_s6 }
  0x3b   : > { %p1130_p0 = scmp.ne.s32.totalorder %s1128_s22, %s1129_s26  ;;  %p1135_p4 = scmp.lt.s32.totalorder %s1133_s4, %s1129_s26 }
  0x3d   : > { %p1131_p1 = pnand %p1130_p0, %p1378_p5  ;;  %p1136_p7 = por %p1135_p4, %p1134_p3 }
  0x3f   : > { %p1132_p2 = pneg %p1131_p1 }
  0x41   : > { %p1137_p8 = pnand %p1136_p7, %p1132_p2 }
  0xaf   : > { %v462_v13 = vpop.f32.mrf.mxu1 }
  0xb0   : > { %915 = vmatpush.xpose.msk.msra.mxu2 %vm441_vm0, %v462_v13 }
  0xb2   : > { %v406_v14 = vpop.f32.mrf.mxu0 }
  0xb3   : > { %594 = vperm.xlu2 %1036, %v406_v14   ;;  %526 = vperm.xlu1 %1034, %v406_v14   ;;  %v504_v15 = vadd.f32 %v503_v10, %v406_v14  ;;  %v536_v16 = vadd.f32 %v535_v11, %v406_v14  ;;  %v570_v17 = vadd.f32 %v569_v12, %v406_v14 }
  0xb4   : > { %409 = vxpose.xlu0.b32.start.end [1/1] (short) (narrow) %v406_v14, 8  ;;  %916 = vmatmul.msk.f32.vlgmr.msra.gmra.mxu2 %vm441_vm0, %v462_v13  ;;  %v604_v23 = vadd.f32 %v603_v18, %v406_v14 }
  0xb5   : > { %v505_v19 = vmax.f32 %v504_v15, -14.0  ;;  %v537_v20 = vmax.f32 %v536_v16, -14.0  ;;  %v571_v24 = vmax.f32 %v570_v17, -14.0 }
  0xb6   : > { %v605_v29 = vmax.f32 %v604_v23, -14.0 }
  0xb7   : > { %v506_v21 = vmin.f32 %v505_v19, 2.0  ;;  %v538_v22 = vmin.f32 %v537_v20, 2.0  ;;  %v572_v30 = vmin.f32 %v571_v24, 2.0 }
  0xb8   : > { %v606_v31 = vmin.f32 %v605_v29, 2.0 }
  0xb9   : > { %v512_v25 = vmul.f32 1.442695, %v506_v21  ;;  %v545_v26 = vmul.f32 1.442695, %v538_v22  ;;  %v579_v32 = vmul.f32 1.442695, %v572_v30 }
  0xba   : > { %v613_v34 = vmul.f32 1.442695, %v606_v31 }
  0xbb   : > { %1035 = vset.pattern.permute.xlu1 %v1283_v27  ;;  %1037 = vset.pattern.permute.xlu2 %v1284_v28  ;;  %1042 = vpow2.f32 %v512_v25 }
  0xbc   : > { %560 = vperm.xlu1 %1035, %v406_v14   ;;  %1044 = vpow2.f32 %v545_v26 }
  0xbd   : > { %1046 = vpow2.f32 %v579_v32 }
  0xbe   : > { %1048 = vpow2.f32 %v613_v34 }
  0xc1   : > { %v1043_v33 = vpop.eup %1042 }
  0xc2   : > { %518 = vperm.xlu2 %1037, %v1043_v33   ;;  %v1045_v35 = vpop.eup %1044 }
  0xc3   : > { %v1047_v37 = vpop.eup %1046 }
  0xc4   : > { %1038 = vset.pattern.permute.xlu1 %v1285_v36  ;;  %v1049_v39 = vpop.eup %1048 }
  0xc5   : > { %551 = vperm.xlu1 %1038, %v1045_v35  }
  0xca   : > { %1039 = vset.pattern.permute.xlu2 %v1286_v38 }
  0xcb   : > { %585 = vperm.xlu2 %1039, %v1047_v37  }
  0xcd   : > { %1040 = vset.pattern.permute.xlu1 %v1287_v40 }
  0xce   : > { %619 = vperm.xlu1 %1040, %v1049_v39  }
 0x10d   : > { %v595_v47 = vpop.permute.xlu2 %594 }
 0x11b   : > { %1033 = vset.pattern.permute.xlu0 %v1288_v41 }
 0x11c   : > { %v519_v7 = vpop.permute.xlu2 %518 }
 0x122   : > { %495 = vperm.xlu0 %1033, %v406_v14  }
 0x125   : > { %v527_v43 = vpop.permute.xlu1 %526  ;;  %v586_v21 = vpop.permute.xlu2 %585 }
 0x12a   : > { %1041 = vset.pattern.permute.xlu0 %v1287_v40 }
 0x12e   : > { %v561_v44 = vpop.permute.xlu1 %560 }
 0x137   : > { %v485_v42 = vpop.f32.mrf.mxu2  ;;  %v552_v8 = vpop.permute.xlu1 %551 }
 0x138   : > { %489 = vst.msk [vmem:[%s1458_s12] sm:$0xff] %vm488_vm2, %v485_v42  ;;  %v490_v46 = vsub.f32 0.0, %v485_v42 }
 0x13a   : > { %v491_v62 = vmul.f32 1.442695, %v490_v46 }
 0x140   : > { %v620_v24 = vpop.permute.xlu1 %619 }
 0x158   : > { %v1462_v45 = vpop.trf.xlu0 }
 0x159   : > { %v507_v48 = vadd.f32 %v503_v10, %v1462_v45  ;;  %v529_v49 = vperm.slane %v1462_v45, 1  ;;  %v539_v50 = vadd.f32 %v535_v11, %v1462_v45  ;;  %v563_v51 = vperm.slane %v1462_v45, 2 }
 0x15a   : > { %v573_v52 = vadd.f32 %v569_v12, %v1462_v45  ;;  %v597_v53 = vperm.slane %v1462_v45, 3  ;;  %v607_v54 = vadd.f32 %v603_v18, %v1462_v45 }
 0x15b   : > { %v508_v55 = vmax.f32 %v507_v48, -14.0  ;;  %v530_v56 = vsub.f32 %v527_v43, %v529_v49  ;;  %v540_v57 = vmax.f32 %v539_v50, -14.0  ;;  %v564_v58 = vsub.f32 %v561_v44, %v563_v51 }
 0x15c   : > { %v574_v59 = vmax.f32 %v573_v52, -14.0  ;;  %v598_v60 = vsub.f32 %v595_v47, %v597_v53  ;;  %v608_v61 = vmax.f32 %v607_v54, -14.0 }
 0x15d   : > { %v1477_v63 = vmin.f32 %v508_v55, 2.0  ;;  %1050 = vtanh.f32 %v530_v56  ;;  %v1479_v0 = vmin.f32 %v540_v57, 2.0 }
 0x15e   : > { %1052 = vtanh.f32 %v564_v58  ;;  %v1481_v1 = vmin.f32 %v574_v59, 2.0  ;;  %v1483_v2 = vmin.f32 %v608_v61, 2.0 }
 0x15f   : > { %v514_v3 = vmul.f32 1.442695, %v1477_v63  ;;  %v547_v4 = vmul.f32 1.442695, %v1479_v0  ;;  %1054 = vtanh.f32 %v598_v60 }
 0x160   : > { %v581_v5 = vmul.f32 1.442695, %v1481_v1  ;;  %v615_v6 = vmul.f32 1.442695, %v1483_v2  ;;  %1056 = vpow2.f32 %v491_v62 }
 0x161   : > { %1058 = vpow2.f32 %v514_v3 }
 0x162   : > { %1060 = vpow2.f32 %v547_v4 }
 0x163   : > { %v1051_v9 = vpop.eup %1050  ;;  %1062 = vpow2.f32 %v581_v5 }
 0x164   : > { %v1053_v10 = vpop.eup %1052  ;;  %1064 = vpow2.f32 %v615_v6  ;;  %917 = vst.msk [vmem:[%s1493_s19 + $0x8] sm:$0xff] %vm488_vm2, %v1051_v9 }
 0x165   : > { %v1055_v11 = vpop.eup %1054  ;;  %921 = vst.msk [vmem:[%s1493_s19 + $0x10] sm:$0xff] %vm488_vm2, %v1053_v10 }
 0x166   : > { %v1057_v12 = vpop.eup %1056  ;;  %925 = vst.msk [vmem:[%s1493_s19 + $0x18] sm:$0xff] %vm488_vm2, %v1055_v11 }
 0x167   : > { %v1059_v13 = vpop.eup %1058 }
 0x168   : > { %v1061_v14 = vpop.eup %1060  ;;  %v521_v15 = vperm.slane %v1059_v13, 4 }
 0x169   : > { %v1063_v16 = vpop.eup %1062  ;;  %v554_v17 = vperm.slane %v1061_v14, 5 }
 0x16a   : > { %v1065_v18 = vpop.eup %1064  ;;  %v588_v19 = vperm.slane %v1063_v16, 6  ;;  %v522_v20 = vadd.f32 %v521_v15, %v519_v7 }
 0x16b   : > { %v622_v22 = vperm.slane %v1065_v18, 7  ;;  %v555_v23 = vadd.f32 %v554_v17, %v552_v8 }
 0x16c   : > { %v523_v25 = vmul.f32 %v1057_v12, %v522_v20  ;;  %v589_v26 = vadd.f32 %v588_v19, %v586_v21 }
 0x16d   : > { %v556_v27 = vmul.f32 %v1057_v12, %v555_v23  ;;  %v623_v28 = vadd.f32 %v622_v22, %v620_v24 }
 0x16e   : > { %524 = vst.msk [vmem:[%s354_s0] sm:$0xff] %vm488_vm2, %v523_v25  ;;  %v590_v29 = vmul.f32 %v1057_v12, %v589_v26 }
 0x16f   : > { %920 = vst.msk [vmem:[%s354_s0 + $0x8] sm:$0xff] %vm488_vm2, %v556_v27  ;;  %v624_v30 = vmul.f32 %v1057_v12, %v623_v28 }
 0x170   : > { %924 = vst.msk [vmem:[%s354_s0 + $0x10] sm:$0xff] %vm488_vm2, %v590_v29 }
 0x171   : > { %928 = vst.msk [vmem:[%s354_s0 + $0x18] sm:$0xff] %vm488_vm2, %v624_v30 }
 0x172   : > { %1140 = shalt.err (!%p1137_p8)
}
 0x173   : > { %s1289_s0 = smov 128   ;;  %s1290_s18 = smov 8   ;;  %vm577_vm5 = vcmask 63494  }
 0x174   : > { %952 = dma.vmem_to_hbm [thread:$0]  (%p1378_p5), %s673_s1, 512, %s675_s23, %s1539_s20, %s1289_s0, %s1289_s0, %s1290_s18  }
 0x175   : > { %s1155_s21 = sshra.s32 %s1531_s24, 4  ;;  %s1161_s22 = scalar_lea.hbm %s1643_s7, 16  ;;  %s1156_s21 = int_to_ptr.hbm [resolvable:$true] %s1155_s21 }
 0x176   : > { %s1157_s29 = scalar_lea.hbm %s1156_s21, 8  ;;  %p1162_p12 = scmp.lt.s32.totalorder %s1156_s21, %s1643_s7 }
 0x177   : > { %p1158_p9 = scmp.ne.s32.totalorder %s1156_s21, %s1157_s29  ;;  %p1163_p13 = scmp.lt.s32.totalorder %s1161_s22, %s1157_s29 }
 0x179   : > { %p1159_p10 = pnand %p1158_p9, %p1378_p5  ;;  %p1164_p0 = por %p1163_p13, %p1162_p12 }
 0x17b   : > { %p1160_p11 = pneg %p1159_p10 }
 0x17d   : > { %p1165_p1 = pnand %p1164_p0, %p1160_p11 }
 0x17f   : > { %1168 = shalt.err (!%p1165_p1)
}
 0x180   : > { %953 = dma.vmem_to_hbm [thread:$0]  (%p1378_p5), %s1505_s17, 128, %s1531_s24, %s1539_s20   ;;  %511 = vst.msk [vmem:[%s1520_s2 - $0x4] sm:$0x10] %vm510_vm3, %v1477_v63  ;;  %vm611_vm6 = vcmask 64519  }
 0x181   : > { %919 = vst.msk [vmem:[%s1520_s2 - $0x4] sm:$0x20] %vm543_vm4, %v1479_v0  ;;  %s643_s1 = scalar_lea.sflag [#allocation12], %s1455_s25  ;;  %s1183_s23 = sshra.s32 %s705_s13, 4  ;;  %s1184_s23 = int_to_ptr.hbm [resolvable:$true] %s1183_s23 }
 0x182   : > { %923 = vst.msk [vmem:[%s1520_s2 - $0x4] sm:$0x40] %vm577_vm5, %v1481_v1  ;;  %s1185_s21 = scalar_lea.hbm %s1184_s23, 4  ;;  %s1189_s20 = scalar_lea.hbm %s1644_s8, 8 }
 0x183   : > { %927 = vst.msk [vmem:[%s1520_s2 - $0x4] sm:$0x80] %vm611_vm6, %v1483_v2  ;;  %p1186_p2 = scmp.ne.s32.totalorder %s1184_s23, %s1185_s21  ;;  %p1190_p7 = scmp.lt.s32.totalorder %s1184_s23, %s1644_s8 }
 0x184   : > { %p1191_p8 = scmp.lt.s32.totalorder %s1189_s20, %s1185_s21 }
 0x185   : > { %p1187_p3 = pnand %p1186_p2, %p1378_p5 }
 0x186   : > { %p1192_p9 = por %p1191_p8, %p1190_p7 }
 0x187   : > { %p1188_p4 = pneg %p1187_p3 }
 0x189   : > { %p1193_p10 = pnand %p1192_p9, %p1188_p4 }
 0x18b   : > { %1196 = shalt.err (!%p1193_p10)
}
 0x18c   : > { %s1291_s2 = smov 16   ;;  %s1292_s4 = smov 1   ;;  %v498_v31 = vperm.slane %v1462_v45, 0 }
 0x18d   : > { %954 = dma.vmem_to_hbm [thread:$0]  (%p1378_p5), %s1533_s10, 64, %s705_s13, %s643_s1, %s1291_s2, %s1291_s2, %s1292_s4  }
 0x18e   : > { %s1665_s14 = sshll.u32 %s1359_s9, 5  ;;  %s655_s23 = sshll.u32 %s1493_s19, 4  ;;  %s656_s23 = int_to_ptr.vmem [resolvable:$true] %s655_s23 }
 0x18f   : > { %s654_s12 = scalar_lea.hbm %s1641_s5, %s1665_s14  ;;  %s628_s17 = scalar_lea.sflag [#allocation4], %s1455_s25 }
 0x190   : > { %s657_s21 = sshll.u32 %s654_s12, 4  ;;  %s1217_s24 = scalar_lea.hbm %s1641_s5, 64  ;;  %s658_s21 = int_to_ptr.hbm [resolvable:$true] %s657_s21 }
 0x191   : > { %s1211_s10 = sshra.s32 %s658_s21, 4  ;;  %s1212_s10 = int_to_ptr.hbm [resolvable:$true] %s1211_s10 }
 0x192   : > { %s1213_s13 = scalar_lea.hbm %s1212_s10, 32  ;;  %p1218_p0 = scmp.lt.s32.totalorder %s1212_s10, %s1641_s5 }
 0x193   : > { %p1214_p11 = scmp.ne.s32.totalorder %s1212_s10, %s1213_s13  ;;  %p1219_p1 = scmp.lt.s32.totalorder %s1217_s24, %s1213_s13 }
 0x194   : > { %v496_v32 = vpop.permute.xlu0 %495 }
 0x195   : > { %v499_v33 = vsub.f32 %v496_v32, %v498_v31  ;;  %p1215_p12 = pnand %p1214_p11, %p1378_p5  ;;  %p1220_p2 = por %p1219_p1, %p1218_p0 }
 0x197   : > { %1066 = vtanh.f32 %v499_v33  ;;  %p1216_p13 = pneg %p1215_p12 }
 0x199   : > { %p1221_p3 = pnand %p1220_p2, %p1216_p13 }
 0x19d   : > { %v1067_v34 = vpop.eup %1066 }
 0x19e   : > { %501 = vst.msk [vmem:[%s1493_s19] sm:$0xff] %vm488_vm2, %v1067_v34 }
 0x19f   : > { %1224 = shalt.err (!%p1221_p3)
}
 0x1a0   : > { %951 = dma.vmem_to_hbm [thread:$0]  (%p1378_p5), %s656_s23, 512, %s658_s21, %s628_s17, %s1289_s0, %s1289_s0, %s1290_s18  }
 0x1a1 PF: > { %p983_p4 = scmp.ge.s32.totalorder %s1275_s30, 2  ;;  %s719_s25 = sand.u32 1, %s1263_s27  }
 0x1a2   : > { %s720_s19 = scalar_lea.sflag [#allocation4], %s719_s25 }
 0x1a3   : > { %p967_p7 = pnand %p983_p4, %p1382_p6 }
 0x1a5   : > { %p968_p8 = pneg %p967_p7 }
 0x1a7   : > { %1250 = dma.done.wait (%p968_p8), %s720_s19, 512  }
 0x1a8   : > { %1252 = vsyncadd (%p968_p8), %s720_s19, 4294966784  ;;  %s1666_s3 = sadd.s32 4294967294, %s1275_s30  }
 0x1a9   : > { %s729_s2 = sand.u32 1, %s1666_s3  }
 0x1aa   : > { %s730_s15 = scalar_lea.sflag [#allocation9], %s729_s2 }
 0x1ab   : > { %1254 = dma.done.wait (%p968_p8), %s730_s15, 640  }
 0x1ac   : > { %1256 = vsyncadd (%p968_p8), %s730_s15, 4294966656  ;;  %s750_s4 = scalar_lea.sflag [#allocation12], %s719_s25 }
 0x1ad   : > { %1258 = dma.done.wait (%p968_p8), %s750_s4, 64  }
 0x1ae   : > { %1260 = vsyncadd (%p968_p8), %s750_s4, 4294967232  ;;  %s1667_s0 = sld [smem:[#allocation18_spill]]  ;;  %p27_p5 = scmp.ge.s32.totalorder %s1363_s11, 4  }
 0x1af   : > { %s1668_s29 = sld [smem:[#allocation19_spill]]  ;;  %s1669_s27 = smov %s1267_s28 }
 0x1b0   : > { %s1671_s30 = smov %s1363_s11  ;;  %29 = sbr.rel (!%p27_p5) target bundleno = 15 (0xf), region = 146 }
 0x1b4   : > { %s1670_s28 = smov %s1667_s0 }
 0x1b5   :  { %756 = vsyncpa [#allocation3], 1 }
 0x1b6   :  { %758 = vsyncpa [#allocation3 + $0x1], 1 }
 0x1b7   :  { %759 = vsyncpa [#allocation4], 1 }
 0x1b8   :  { %761 = vsyncpa [#allocation4 + $0x1], 1 }
 0x1b9   :  { %762 = vsyncpa [#allocation9], 1 }
 0x1ba   :  { %764 = vsyncpa [#allocation9 + $0x1], 1 }
 0x1bb   :  { %765 = vsyncpa [#allocation12], 1 }
 0x1bc   :  { %767 = vsyncpa [#allocation12 + $0x1], 1 }
 0x1bd   :  { %768 = vsyncpa [#allocation5], 1 }
 0x1be   :  { %770 = vsyncpa [#allocation5 + $0x1], 1 }

</bundles_post_ra>
